<compile_context>
chip_gen: v7x
topology: tpu7x:2x2x1
jax: 0.10.0
libtpu: 0.0.40
codegen_flags: <defaults>
</compile_context>

<pallas_src>
import jax
import jax.numpy as jnp
from jax.experimental import pallas as pl
from jax.experimental.pallas import tpu as pltpu


def _round_up(x, m):
    return (x + m - 1) // m * m


def _choose_tile(size, lane_align, pref_align, cap):
    """Smallest lane-aligned tile covering `size`; prefer pref_align (256) multiples; capped."""
    t = _round_up(size, lane_align)
    if t >= pref_align:
        t = _round_up(t, pref_align)
    return min(t, cap)


def dense_prelu_kernel(alpha_ref, x_ref, w_ref, o_ref, acc_ref):
    # Grid: (i over M tiles, j over N tiles, k over K tiles), K innermost (reduction).
    k = pl.program_id(2)

    @pl.when(k == 0)
    def _():
        acc_ref[...] = jnp.zeros_like(acc_ref)

    # x tile (tm, tk) @ W tile (tk, tn): canonical MXU contraction, f32 accumulation.
    acc_ref[...] += jnp.dot(
        x_ref[...], w_ref[...], preferred_element_type=jnp.float32
    )

    @pl.when(k == pl.num_programs(2) - 1)
    def _():
        y = acc_ref[...]
        alpha = alpha_ref[0]                    # scalar PReLU slope (num_parameters=1), SMEM
        y = jnp.where(y >= 0, y, alpha * y)     # PReLU epilogue on the VPU
        o_ref[...] = y.astype(o_ref.dtype)


def make_dense_forward(weight, alpha):
    """One-time parameter prep + jitted forward(x).

    weight: (out_size, in_size) f32, PyTorch nn.Linear layout.
    alpha:  scalar f32 (nn.PReLU default num_parameters=1).
    Returns forward(x: (B, in_size) f32) -> (B, out_size) f32.
    """
    out_size, in_size = weight.shape

    # Lane-dense, 256-preferring tiles for N (output) and K (contraction).
    tn = _choose_tile(out_size, 128, 256, 512)
    tk = _choose_tile(in_size, 128, 256, 1024)
    n_pad = _round_up(out_size, tn)
    k_pad = _round_up(in_size, tk)

    # v7x megacore: guarantee >=2 parallel N tiles when the padded width allows, so that
    # single-M-tile (small batch) calls still shard across both TensorCores. n_pad unchanged.
    if n_pad // tn < 2 and n_pad >= 256:
        tn = n_pad // 2  # n_pad is a multiple of 256 here -> tn stays a multiple of 128

    # Amortized parameter prep: zero-pad to tile multiples, transpose once to (K, N).
    w_t = jnp.pad(
        jnp.asarray(weight, jnp.float32),
        ((0, n_pad - out_size), (0, k_pad - in_size)),
    ).T  # (k_pad, n_pad)
    w_t = jax.device_put(w_t)
    alpha_arr = jnp.asarray(alpha, jnp.float32).reshape(1)

    @jax.jit
    def forward(x):
        B, in_size_x = x.shape
        assert in_size_x == in_size

        tm = min(_round_up(B, 8), 512)
        m_pad = _round_up(B, tm)

        # Only x needs per-call padding (zeros along K contribute nothing to the dot;
        # padded M rows are sliced off below; PReLU(0) == 0 keeps pads benign).
        if (m_pad, k_pad) != (B, in_size):
            x_p = jnp.pad(x, ((0, m_pad - B), (0, k_pad - in_size)))
        else:
            x_p = x

        grid = (m_pad // tm, n_pad // tn, k_pad // tk)

        out = pl.pallas_call(
            dense_prelu_kernel,
            out_shape=jax.ShapeDtypeStruct((m_pad, n_pad), jnp.float32),
            grid_spec=pltpu.PrefetchScalarGridSpec(
                num_scalar_prefetch=1,  # alpha -> SMEM once, before the grid runs
                grid=grid,
                in_specs=[
                    # x: (tm, tk) tile, varies over (i, k)
                    pl.BlockSpec((tm, tk), lambda i, j, k, alpha: (i, k)),
                    # W^T: (tk, tn) tile, canonical RHS layout, varies over (k, j)
                    pl.BlockSpec((tk, tn), lambda i, j, k, alpha: (k, j)),
                ],
                # Output tile independent of k -> VMEM-resident accumulator across the K loop.
                out_specs=pl.BlockSpec((tm, tn), lambda i, j, k, alpha: (i, j)),
                scratch_shapes=[pltpu.VMEM((tm, tn), jnp.float32)],
            ),
            compiler_params=pltpu.CompilerParams(
                dimension_semantics=("parallel", "parallel", "arbitrary"),
                # Worst-case double-buffered tiles + accumulator ~11 MiB; 48 MiB keeps
                # headroom yet stays under v7x's 64 MiB/TC physical VMEM.
                vmem_limit_bytes=48 << 20,
            ),
            cost_estimate=pl.CostEstimate(
                flops=2 * m_pad * n_pad * k_pad,
                transcendentals=0,
                bytes_accessed=4 * (m_pad * k_pad + k_pad * n_pad + m_pad * n_pad),
            ),
        )(alpha_arr, x_p, w_t)

        if (m_pad, n_pad) != (B, out_size):
            out = out[:B, :out_size]
        return out

    return forward


def reference(x, weight, alpha):
    y = x @ weight.T
    return jnp.where(y >= 0, y, alpha * y)


if __name__ == "__main__":
    key = jax.random.PRNGKey(0)
    kx, kw, kx2, kw2 = jax.random.split(key, 4)

    # Small shapes consistent with the module.
    batch, in_size, out_size = 8, 32, 16
    x = jax.random.normal(kx, (batch, in_size), dtype=jnp.float32)
    bound = 1.0 / (in_size ** 0.5)  # nn.Linear default init bound
    weight = jax.random.uniform(
        kw, (out_size, in_size), dtype=jnp.float32, minval=-bound, maxval=bound
    )
    alpha = jnp.float32(0.25)  # nn.PReLU default slope

    forward = make_dense_forward(weight, alpha)
    out = jax.block_until_ready(forward(x))
    ref = reference(x, weight, alpha)
    assert out.shape == (batch, out_size)
    assert jnp.allclose(out, ref, atol=1e-5, rtol=1e-5)

    # Second (slightly larger, ragged) shape: exercises N-tile split + padding paths.
    batch2, in_size2, out_size2 = 64, 384, 300
    x2 = jax.random.normal(kx2, (batch2, in_size2), dtype=jnp.float32)
    bound2 = 1.0 / (in_size2 ** 0.5)
    weight2 = jax.random.uniform(
        kw2, (out_size2, in_size2), dtype=jnp.float32, minval=-bound2, maxval=bound2
    )
    forward2 = make_dense_forward(weight2, alpha)
    out2 = jax.block_until_ready(forward2(x2))
    ref2 = reference(x2, weight2, alpha)
    assert out2.shape == (batch2, out_size2)
    assert jnp.allclose(out2, ref2, atol=1e-4, rtol=1e-4)

    # TODO(synk): self.bn (BatchNorm1d) is constructed in __init__ but unused in forward(); omitted.
    print("KERNEL_OK")
</pallas_src>

<mosaic_0001>
module attributes {stable_mosaic.version = 11 : i64} {
  func.func @dense_prelu_kernel(%arg0: i32, %arg1: i32, %arg2: i32, %arg3: memref<1xf32, #tpu.memory_space<smem>>, %arg4: memref<8x128xf32, #tpu.memory_space<vmem>>, %arg5: memref<128x128xf32, #tpu.memory_space<vmem>>, %arg6: memref<8x128xf32, #tpu.memory_space<vmem>>, %arg7: memref<8x128xf32, #tpu.memory_space<vmem>>) attributes {dimension_semantics = [#tpu.dimension_semantics<parallel>, #tpu.dimension_semantics<parallel>, #tpu.dimension_semantics<arbitrary>], iteration_bounds = array<i64: 1, 1, 1>, scalar_prefetch = 1 : i64, scratch_operands = 1 : i64, tpu.core_type = #tpu.core_type<tc>, window_params = [{transform_indices = @transform_0, window_bounds = array<i64: 8, 128>}, {transform_indices = @transform_1, window_bounds = array<i64: 128, 128>}, {transform_indices = @transform_2, window_bounds = array<i64: 8, 128>}]} {
    %c0_i32 = arith.constant 0 : i32
    %0 = arith.cmpi eq, %arg2, %c0_i32 : i32
    %1 = arith.extui %0 : i1 to i32
    %c0_i32_0 = arith.constant 0 : i32
    %2 = arith.cmpi ne, %1, %c0_i32_0 : i32
    scf.if %2 {
      %cst_10 = arith.constant 0.000000e+00 : f32
      %12 = vector.broadcast %cst_10 : f32 to vector<8x128xf32>
      %c0_11 = arith.constant 0 : index
      %c0_12 = arith.constant 0 : index
      %13 = vector.load %arg7[%c0_11, %c0_12] : memref<8x128xf32, #tpu.memory_space<vmem>>, vector<8x128xf32>
      tpu.vector_store %arg7[%c0_11, %c0_12], %12 {strides = array<i32>} : memref<8x128xf32, #tpu.memory_space<vmem>>, vector<8x128xf32>,
    } else {
    }
    %c0 = arith.constant 0 : index
    %c0_1 = arith.constant 0 : index
    %3 = vector.load %arg7[%c0, %c0_1] : memref<8x128xf32, #tpu.memory_space<vmem>>, vector<8x128xf32>
    %c0_2 = arith.constant 0 : index
    %c0_3 = arith.constant 0 : index
    %4 = vector.load %arg4[%c0_2, %c0_3] : memref<8x128xf32, #tpu.memory_space<vmem>>, vector<8x128xf32>
    %c0_4 = arith.constant 0 : index
    %c0_5 = arith.constant 0 : index
    %5 = vector.load %arg5[%c0_4, %c0_5] : memref<128x128xf32, #tpu.memory_space<vmem>>, vector<128x128xf32>
    %cst = arith.constant dense<0.000000e+00> : vector<8x128xf32>
    %6 = tpu.matmul %4, %5, %cst {dimension_numbers = #tpu.dot_dimension_numbers<[1], [0], [0], [1], [0, 0, 1, 1], [], []>} : vector<8x128xf32>, vector<128x128xf32>, vector<8x128xf32> -> vector<8x128xf32>
    %7 = arith.addf %3, %6 : vector<8x128xf32>
    %c0_6 = arith.constant 0 : index
    %c0_7 = arith.constant 0 : index
    %8 = vector.load %arg7[%c0_6, %c0_7] : memref<8x128xf32, #tpu.memory_space<vmem>>, vector<8x128xf32>
    tpu.vector_store %arg7[%c0_6, %c0_7], %7 {strides = array<i32>} : memref<8x128xf32, #tpu.memory_space<vmem>>, vector<8x128xf32>,
    %c0_i32_8 = arith.constant 0 : i32
    %9 = arith.cmpi eq, %arg2, %c0_i32_8 : i32
    %10 = arith.extui %9 : i1 to i32
    %c0_i32_9 = arith.constant 0 : i32
    %11 = arith.cmpi ne, %10, %c0_i32_9 : i32
    scf.if %11 {
      %c0_10 = arith.constant 0 : index
      %c0_11 = arith.constant 0 : index
      %12 = vector.load %arg7[%c0_10, %c0_11] : memref<8x128xf32, #tpu.memory_space<vmem>>, vector<8x128xf32>
      %c0_12 = arith.constant 0 : index
      %13 = memref.load %arg3[%c0_12] : memref<1xf32, #tpu.memory_space<smem>>
      %cst_13 = arith.constant 0.000000e+00 : f32
      %14 = vector.broadcast %cst_13 : f32 to vector<8x128xf32>
      %15 = arith.cmpf oge, %12, %14 : vector<8x128xf32>
      %16 = vector.broadcast %13 : f32 to vector<8x128xf32>
      %17 = arith.mulf %16, %12 : vector<8x128xf32>
      %18 = arith.select %15, %12, %17 : vector<8x128xi1>, vector<8x128xf32>
      %c0_14 = arith.constant 0 : index
      %c0_15 = arith.constant 0 : index
      %19 = vector.load %arg6[%c0_14, %c0_15] : memref<8x128xf32, #tpu.memory_space<vmem>>, vector<8x128xf32>
      tpu.vector_store %arg6[%c0_14, %c0_15], %18 {strides = array<i32>} : memref<8x128xf32, #tpu.memory_space<vmem>>, vector<8x128xf32>,
    } else {
    }
    return
  }
  func.func @transform_0(%arg0: i32, %arg1: i32, %arg2: i32, %arg3: memref<1xf32, #tpu.memory_space<smem>>) -> (i32, i32) {
    %c0_i32 = arith.constant 0 : i32
    return %arg0, %arg2 : i32, i32
  }
  func.func @transform_1(%arg0: i32, %arg1: i32, %arg2: i32, %arg3: memref<1xf32, #tpu.memory_space<smem>>) -> (i32, i32) {
    %c0_i32 = arith.constant 0 : i32
    return %arg2, %arg1 : i32, i32
  }
  func.func @transform_2(%arg0: i32, %arg1: i32, %arg2: i32, %arg3: memref<1xf32, #tpu.memory_space<smem>>) -> (i32, i32) {
    %c0_i32 = arith.constant 0 : i32
    return %arg0, %arg1 : i32, i32
  }
}

</mosaic_0001>

<bundles_post_ra>
// kernel: forward.1
= control target key start
LH: loop header
LB: loop body
LE: loop exit
PB: predicated region body
PF: predicated region fallthrough
CT: control target
= control target key end

     0   :  { %9 = vsyncpa [#allocation6], 0  ;;  %s336_s0 = inlined_call_operand.<no memory space> [shape: f32[1], index: 0, kind: input, shape index: {}]   ;;  %s337_s1 = inlined_call_operand.vmem [shape: f32[8,128], index: 1, kind: input, shape index: {}]   ;;  %s338_s2 = inlined_call_operand.hbm [shape: f32[128,128], index: 2, kind: input, shape index: {}]   ;;  %s339_s3 = inlined_call_operand.hbm [shape: f32[8,128], index: 3, kind: output, shape index: {}]  }
   0x1   :  { %10 = vsyncpa [#allocation7], 0  ;;  %s279_s12 = smov [#allocation5]   ;;  %s231_s16 = scalar_lea.hbm %s338_s2, 2048 }
   0x2   :  { %s18_s13 = sshll.u32 %s279_s12, 4  ;;  %p232_p0 = scmp.ne.s32.totalorder %s338_s2, %s231_s16  ;;  %s19_s13 = int_to_ptr.vmem [resolvable:$true] %s18_s13 }
   0x3   :  { %p235_p1 = scmp.lt.u32.totalorder %s231_s16, %s338_s2 }
   0x5   :  { %p237_p2 = pnand %p235_p1, %p232_p0 }
   0x7   :  { %240 = shalt.err (!%p237_p2)
}
   0x8   :  { %s241_s21 = scalar_lea.vmem %s19_s13, 2048  ;;  %p246_p4 = scmp.lt.s32.totalorder %s19_s13, %s19_s13 }
   0x9   :  { %p242_p3 = scmp.ne.s32.totalorder %s19_s13, %s241_s21  ;;  %p247_p5 = scmp.lt.s32.totalorder %s241_s21, %s241_s21 }
   0xb   :  { %p248_p6 = por %p247_p5, %p246_p4 }
   0xd   :  { %p249_p7 = pnand %p248_p6, %p242_p3 }
   0xf   :  { %252 = shalt.err (!%p249_p7)
}
  0x10   :  { %s280_s22 = smov 128   ;;  %s281_s23 = smov 8  }
  0x11   :  { %24 = dma.hbm_to_vmem [thread:$0]  %s338_s2, 2048, %s19_s13, [#allocation6], %s280_s22, %s280_s22, %s281_s23  }
  0x12   :  { %275 = dma.done.wait [#allocation6], 2048  }
  0x13   :  { %276 = vsyncadd [#allocation6], 4294965248  ;;  %v282_v0 = vmov 0.0|0.0   ;;  %vm283_vm0 = vmmov 0   ;;  %v284_v1 = vmov 0.0   ;;  %v35_v2 = vld [vmem:[#allocation5] sm:$0xff]  ;;  %v129_v27 = vstv %s336_s0 }
  0x14   :  { %200 = vmatprep.subr.bf16.mxu0 %v282_v0  ;;  %197 = vmatprep.mubr.msk.f32.mxu0 %vm283_vm0, %v284_v1  ;;  %v36_v3 = vld [vmem:[#allocation5 + $0x8] sm:$0xff]  ;;  %v37_v4 = vld [vmem:[#allocation5 + $0x10] sm:$0xff]  ;;  %v38_v6 = vld [vmem:[#allocation5 + $0x18] sm:$0xff]  ;;  %s285_s29 = smov [#allocation8]  }
  0x15   :  { %v201_v5 = vpack.c.bf16 %v36_v3, %v35_v2  ;;  %v204_v7 = vpack.c.bf16 %v38_v6, %v37_v4  ;;  %v39_v8 = vld [vmem:[#allocation5 + $0x20] sm:$0xff]  ;;  %v40_v9 = vld [vmem:[#allocation5 + $0x28] sm:$0xff]  ;;  %v41_v11 = vld [vmem:[#allocation5 + $0x30] sm:$0xff]  ;;  %s139_s30 = sshll.u32 %s285_s29, 4  ;;  %s140_s30 = int_to_ptr.vmem [resolvable:$true] %s139_s30 }
  0x16   :  { %v207_v10 = vpack.c.bf16 %v40_v9, %v39_v8  ;;  %v42_v12 = vld [vmem:[#allocation5 + $0x38] sm:$0xff]  ;;  %v43_v14 = vld [vmem:[#allocation5 + $0x40] sm:$0xff]  ;;  %v44_v15 = vld [vmem:[#allocation5 + $0x48] sm:$0xff]  ;;  %s253_s4 = scalar_lea.vmem %s140_s30, 128  ;;  %p258_p9 = scmp.lt.s32.totalorder %s140_s30, %s140_s30 }
  0x17   :  { %202 = vmatpush3.bf16.msra.mxu0 %v201_v5  ;;  %v210_v13 = vpack.c.bf16 %v42_v12, %v41_v11  ;;  %v213_v16 = vpack.c.bf16 %v44_v15, %v43_v14  ;;  %v45_v17 = vld [vmem:[#allocation5 + $0x50] sm:$0xff]  ;;  %v46_v18 = vld [vmem:[#allocation5 + $0x58] sm:$0xff]  ;;  %v47_v20 = vld [vmem:[#allocation5 + $0x60] sm:$0xff]  ;;  %p254_p8 = scmp.ne.s32.totalorder %s140_s30, %s253_s4  ;;  %p259_p10 = scmp.lt.s32.totalorder %s253_s4, %s253_s4 }
  0x18   :  { %203 = vmatprep.subr.bf16.mxu0 %v282_v0  ;;  %v216_v19 = vpack.c.bf16 %v46_v18, %v45_v17  ;;  %v48_v21 = vld [vmem:[#allocation5 + $0x68] sm:$0xff]  ;;  %v49_v23 = vld [vmem:[#allocation5 + $0x70] sm:$0xff]  ;;  %v50_v24 = vld [vmem:[#allocation5 + $0x78] sm:$0xff] }
  0x19   :  { %v219_v22 = vpack.c.bf16 %v48_v21, %v47_v20  ;;  %v222_v25 = vpack.c.bf16 %v50_v24, %v49_v23  ;;  %v34_v26 = vld [vmem:[%s337_s1] sm:$0xff]  ;;  %p260_p11 = por %p259_p10, %p258_p9 }
  0x1b   :  { %205 = vmatpush3.bf16.msra.mxu0 %v204_v7  ;;  %p261_p12 = pnand %p260_p11, %p254_p8 }
  0x1c   :  { %206 = vmatprep.subr.bf16.mxu0 %v282_v0 }
  0x1f   :  { %208 = vmatpush3.bf16.msra.mxu0 %v207_v10 }
  0x20   :  { %209 = vmatprep.subr.bf16.mxu0 %v282_v0 }
  0x23   :  { %211 = vmatpush3.bf16.msra.mxu0 %v210_v13 }
  0x24   :  { %212 = vmatprep.subr.bf16.mxu0 %v282_v0 }
  0x27   :  { %214 = vmatpush3.bf16.msra.mxu0 %v213_v16 }
  0x28   :  { %215 = vmatprep.subr.bf16.mxu0 %v282_v0 }
  0x2b   :  { %217 = vmatpush3.bf16.msra.mxu0 %v216_v19 }
  0x2c   :  { %218 = vmatprep.subr.bf16.mxu0 %v282_v0 }
  0x2f   :  { %220 = vmatpush3.bf16.msra.mxu0 %v219_v22 }
  0x30   :  { %221 = vmatprep.subr.bf16.mxu0 %v282_v0 }
  0x33   :  { %223 = vmatpush3.bf16.msra.mxu0 %v222_v25 }
  0x36   :  { %198 = vmatmul.mubr.f32.vlgmr.msra.gmra.mrb[0].mxu0 %v34_v26 }
 0x109   :  { %v117_v28 = vpop.f32.mrb[0].mxu0 }
 0x10a   :  { %vm128_vm1 = vcmp.ge.f32.partialorder %v117_v28, 0.0  ;;  %v130_v29 = vmul.f32 %v129_v27, %v117_v28  ;;  %v199_v30 = vpop.f32.mrb[1].mxu0 }
 0x10c   :  { %v131_v31 = vsel %vm128_vm1, %v117_v28, %v130_v29 }
 0x10d   :  { %132 = vst [vmem:[#allocation8] sm:$0xff] %v131_v31 }
 0x10e   :  { %264 = shalt.err (!%p261_p12)
}
 0x10f   :  { %s265_s0 = scalar_lea.hbm %s339_s3, 128 }
 0x110   :  { %p266_p13 = scmp.ne.s32.totalorder %s339_s3, %s265_s0  ;;  %p269_p0 = scmp.lt.u32.totalorder %s265_s0, %s339_s3 }
 0x112   :  { %p271_p1 = pnand %p269_p0, %p266_p13 }
 0x114   :  { %274 = shalt.err (!%p271_p1)
}
 0x115   :  { %142 = dma.vmem_to_hbm [thread:$0]  %s140_s30, 128, %s339_s3, [#allocation7]  }
 0x116   :  { %277 = dma.done.wait [#allocation7], 128  }
 0x117   :  { %278 = vsyncadd [#allocation7], 4294967168 }
 0x118   :  { %146 = vsyncpa [#allocation6], 1 }
 0x119   :  { %147 = vsyncpa [#allocation7], 1 }

</bundles_post_ra>
